<compile_context>
chip_gen: v6e
topology: v6e:2x2x1
jax: 0.10.0
libtpu: 0.0.40
codegen_flags: <defaults>
</compile_context>

<pallas_src>
import numpy as np
import jax
import jax.numpy as jnp
from jax.experimental import pallas as pl
from jax.experimental.pallas import tpu as pltpu


# ---------------------------------------------------------------------------
# Kernels
# ---------------------------------------------------------------------------
def _channel_attn_kernel(gamma_ref, x_ref, o_ref):
    """Single-pass path: whole (Bt, C, S) slab resident per grid step."""
    xb = x_ref[...]                                    # (Bt, C, S) native dtype

    # Gram matrix on the MXU in the input dtype, f32 accumulation.
    energy = jnp.einsum("bis,bjs->bij", xb, xb,
                        preferred_element_type=jnp.float32)    # (Bt, C, C) f32

    # Numerically-stable softmax over the channel axis; EUP approx reciprocal.
    m = jnp.max(energy, axis=-1, keepdims=True)
    e = jnp.exp(energy - m)
    inv = pl.reciprocal(jnp.sum(e, axis=-1, keepdims=True), approx=True)
    attn = (e * inv).astype(xb.dtype)                  # back to MXU input dtype

    out = jnp.einsum("bij,bjs->bis", attn, xb,
                     preferred_element_type=jnp.float32)       # (Bt, C, S) f32

    gamma = gamma_ref[0]                               # scalar from SMEM
    o_ref[...] = (gamma * out + xb.astype(jnp.float32)).astype(o_ref.dtype)


def _energy_softmax_kernel(x_ref, attn_ref, acc_ref):
    """Two-pass path, pass 1: accumulate energy over S tiles; softmax at end."""
    s = pl.program_id(1)

    @pl.when(s == 0)
    def _():
        acc_ref[...] = jnp.zeros_like(acc_ref)

    xb = x_ref[...]                                    # (1, C, Sk)
    acc_ref[...] += jnp.einsum("bis,bjs->bij", xb, xb,
                               preferred_element_type=jnp.float32)

    @pl.when(s == pl.num_programs(1) - 1)
    def _():
        energy = acc_ref[...]
        m = jnp.max(energy, axis=-1, keepdims=True)
        e = jnp.exp(energy - m)
        inv = pl.reciprocal(jnp.sum(e, axis=-1, keepdims=True), approx=True)
        attn_ref[...] = e * inv


def _apply_attn_kernel(gamma_ref, attn_ref, x_ref, o_ref):
    """Two-pass path, pass 2: out_tile = gamma * (attn @ x_tile) + x_tile."""
    xb = x_ref[...]                                    # (1, C, Sk)
    attn = attn_ref[...].astype(xb.dtype)              # (1, C, C)
    out = jnp.einsum("bij,bjs->bis", attn, xb,
                     preferred_element_type=jnp.float32)
    gamma = gamma_ref[0]
    o_ref[...] = (gamma * out + xb.astype(jnp.float32)).astype(o_ref.dtype)


# ---------------------------------------------------------------------------
# VMEM sizing helpers
# ---------------------------------------------------------------------------
def _vmem_budget():
    """(per-step footprint budget, vmem_limit_bytes) sized per chip."""
    phys = None
    try:
        info_fn = getattr(pltpu, "get_tpu_info", None)
        if info_fn is not None:
            phys = getattr(info_fn(), "vmem_capacity_bytes", None)
    except Exception:
        phys = None
    if not phys:
        phys = 64 * 1024 * 1024            # conservative: v7x per-TC VMEM
    vmem_limit = int(min(phys * 3 // 4, 100 * 1024 * 1024))
    # Total estimated per-step footprint budget (blocks double-buffered + f32
    # temps, counted below).  Cap at ~40 MiB so the sizing is safe on v7x
    # (64 MiB/core) while still much larger than the old 8 MiB cap.
    budget = int(min(vmem_limit // 2, 40 * 1024 * 1024))
    return budget, vmem_limit


def _single_pass_bytes(bt, C, S, itemsize):
    """Estimated per-step VMEM footprint of the single-pass kernel."""
    slab = bt * C * S
    cc = bt * C * C
    return (2 * 2 * slab * itemsize        # double-buffered in + out blocks
            + slab * itemsize              # loaded x value
            + 2 * slab * 4                 # f32 `out` + f32 residual pre-cast
            + 4 * cc * 4)                  # energy, e, attn, row stats (f32)


def _two_pass_bytes(C, sk, itemsize):
    """Worst per-step footprint across the two S-tiled kernels."""
    xblk = C * sk
    cc = C * C
    pass1 = (2 * xblk * itemsize           # double-buffered x tile
             + cc * 4                      # accumulator scratch
             + 2 * cc * 4                  # double-buffered attn output block
             + 3 * cc * 4)                 # softmax temps
    pass2 = (2 * cc * 4                    # double-buffered attn block
             + 2 * 2 * xblk * itemsize     # double-buffered x + out tiles
             + 2 * xblk * 4                # f32 out + residual
             + cc * itemsize)              # attn cast
    return max(pass1, pass2)


def _choose_batch_block(B, C, S, itemsize, budget):
    per_batch = _single_pass_bytes(1, C, S, itemsize)
    bt = max(1, min(B, budget // max(per_batch, 1)))
    # >= 2 grid steps per TensorCore on v7x (2 TCs) when B allows; also gives
    # deeper DMA pipelining on single-TC chips.
    target_steps = min(B, 4)
    while bt > 1 and B // bt < target_steps:
        bt -= 1
    while B % bt != 0:                     # every block must be full
        bt -= 1
    return bt


def _choose_s_block(C, S, itemsize, budget):
    """Largest lane-dense (multiple-of-128) S tile dividing S that fits."""
    if S % 128 != 0:
        return None
    best = None
    for sk in range(128, S + 1, 128):
        if S % sk:
            continue
        if _two_pass_bytes(C, sk, itemsize) <= budget:
            best = sk
    return best if best is not None else 128


# ---------------------------------------------------------------------------
# Wrappers
# ---------------------------------------------------------------------------
def _single_pass_call(x2, gamma_arr, B, C, S, bt, vmem_limit):
    grid = (B // bt,)
    return pl.pallas_call(
        _channel_attn_kernel,
        out_shape=jax.ShapeDtypeStruct((B, C, S), x2.dtype),
        grid_spec=pltpu.PrefetchScalarGridSpec(
            num_scalar_prefetch=0,
            grid=grid,
            in_specs=[
                pl.BlockSpec(memory_space=pltpu.MemorySpace.SMEM),   # gamma
                pl.BlockSpec((bt, C, S), lambda b: (b, 0, 0)),       # x slab
            ],
            out_specs=pl.BlockSpec((bt, C, S), lambda b: (b, 0, 0)),
        ),
        compiler_params=pltpu.CompilerParams(
            dimension_semantics=("parallel",),
            vmem_limit_bytes=vmem_limit),
    )(gamma_arr, x2)


def _two_pass_call(x2, gamma_arr, B, C, S, sk, vmem_limit):
    # Pass 1: attn[b] = softmax(sum_over_S_tiles q_tile @ q_tile^T)
    attn = pl.pallas_call(
        _energy_softmax_kernel,
        out_shape=jax.ShapeDtypeStruct((B, C, C), jnp.float32),
        grid_spec=pltpu.PrefetchScalarGridSpec(
            num_scalar_prefetch=0,
            grid=(B, S // sk),
            in_specs=[pl.BlockSpec((1, C, sk), lambda b, s: (b, 0, s))],
            out_specs=pl.BlockSpec((1, C, C), lambda b, s: (b, 0, 0)),
            scratch_shapes=[pltpu.VMEM((1, C, C), jnp.float32)],
        ),
        compiler_params=pltpu.CompilerParams(
            dimension_semantics=("parallel", "arbitrary"),
            vmem_limit_bytes=vmem_limit),
    )(x2)

    # Pass 2: out[b, :, s_tile] = gamma * (attn[b] @ q[b, :, s_tile]) + x tile
    out = pl.pallas_call(
        _apply_attn_kernel,
        out_shape=jax.ShapeDtypeStruct((B, C, S), x2.dtype),
        grid_spec=pltpu.PrefetchScalarGridSpec(
            num_scalar_prefetch=0,
            grid=(B, S // sk),
            in_specs=[
                pl.BlockSpec(memory_space=pltpu.MemorySpace.SMEM),   # gamma
                pl.BlockSpec((1, C, C), lambda b, s: (b, 0, 0)),     # attn
                pl.BlockSpec((1, C, sk), lambda b, s: (b, 0, s)),    # x tile
            ],
            out_specs=pl.BlockSpec((1, C, sk), lambda b, s: (b, 0, s)),
        ),
        compiler_params=pltpu.CompilerParams(
            dimension_semantics=("parallel", "parallel"),
            vmem_limit_bytes=vmem_limit),
    )(gamma_arr, attn, x2)
    return out


def channel_self_attention(x, gamma, *, batch_block=None, s_block=None,
                           force_two_pass=False):
    B, C, H, W = x.shape
    S = H * W
    x2 = x.reshape(B, C, S)                # lane-dense, free reshape
    gamma_arr = jnp.asarray(gamma, dtype=jnp.float32).reshape((1,))
    itemsize = x.dtype.itemsize

    budget, vmem_limit = _vmem_budget()

    # Decide single-pass (whole-S slab, batch-blocked) vs S-tiled two-pass.
    single_fits = _single_pass_bytes(1, C, S, itemsize) <= budget
    use_two_pass = force_two_pass or not single_fits
    if use_two_pass:
        if s_block is None:
            sk = _choose_s_block(C, S, itemsize, budget)
        else:
            sk = s_block
            assert S % sk == 0 and (sk % 128 == 0 or sk == S), \
                "s_block must divide S and be lane-dense (multiple of 128)"
        if sk is not None:
            out = _two_pass_call(x2, gamma_arr, B, C, S, sk, vmem_limit)
            return out.reshape(B, C, H, W)
        # No valid lane-dense S tile: best-effort single pass with Bt=1 below.

    if batch_block is None:
        batch_block = _choose_batch_block(B, C, S, itemsize, budget)
    bt = batch_block
    assert B % bt == 0, "batch_block must divide the batch size"

    out = _single_pass_call(x2, gamma_arr, B, C, S, bt, vmem_limit)
    return out.reshape(B, C, H, W)


# ---------------------------------------------------------------------------
# Pure-JAX reference for verification
# ---------------------------------------------------------------------------
def channel_self_attention_ref(x, gamma):
    B, C, H, W = x.shape
    q = x.reshape(B, C, H * W)
    energy = jnp.einsum("bis,bjs->bij", q, q,
                        precision=jax.lax.Precision.HIGHEST)
    attn = jax.nn.softmax(energy, axis=-1)
    out = jnp.einsum("bij,bjs->bis", attn, q,
                     precision=jax.lax.Precision.HIGHEST)
    return gamma * out.reshape(B, C, H, W) + x


if __name__ == "__main__":
    B, C, H, W = 2, 4, 16, 16              # S = H*W = 256 (lane-dense, 2*128)

    key = jax.random.PRNGKey(0)
    kx, _ = jax.random.split(key)
    x = jax.random.normal(kx, (B, C, H, W), dtype=jnp.float32)

    # nn.Parameter(torch.zeros(1)) initializes gamma to 0; use a nonzero value
    # so the attention path is actually exercised by the check.
    gamma = jnp.float32(0.75)

    out = jax.block_until_ready(channel_self_attention(x, gamma))
    ref = jax.block_until_ready(channel_self_attention_ref(x, gamma))
    np.testing.assert_allclose(np.asarray(out), np.asarray(ref),
                               rtol=2e-3, atol=2e-3)

    # gamma == 0 (the PyTorch init value) must return x unchanged.
    out0 = jax.block_until_ready(channel_self_attention(x, jnp.float32(0.0)))
    np.testing.assert_allclose(np.asarray(out0), np.asarray(x),
                               rtol=1e-6, atol=1e-6)

    # Exercise the S-tiled two-pass fallback (used for large C*S / v7x shapes).
    out2 = jax.block_until_ready(
        channel_self_attention(x, gamma, force_two_pass=True, s_block=128))
    np.testing.assert_allclose(np.asarray(out2), np.asarray(ref),
                               rtol=2e-3, atol=2e-3)

    print("KERNEL_OK")
</pallas_src>

<mosaic_0001>
module attributes {stable_mosaic.version = 11 : i64} {
  func.func @_channel_attn_kernel(%arg0: i32, %arg1: memref<1xf32, #tpu.memory_space<smem>>, %arg2: memref<1x4x256xf32, #tpu.memory_space<vmem>>, %arg3: memref<1x4x256xf32, #tpu.memory_space<vmem>>) attributes {dimension_semantics = [#tpu.dimension_semantics<parallel>], iteration_bounds = array<i64: 2>, scalar_prefetch = 0 : i64, scratch_operands = 0 : i64, tpu.core_type = #tpu.core_type<tc>, window_params = [{transform_indices = @transform_0, window_bounds = array<i64: 1>}, {transform_indices = @transform_1, window_bounds = array<i64: 1, 4, 256>}, {transform_indices = @transform_2, window_bounds = array<i64: 1, 4, 256>}]} {
    %c0 = arith.constant 0 : index
    %c0_0 = arith.constant 0 : index
    %c0_1 = arith.constant 0 : index
    %0 = vector.load %arg2[%c0, %c0_0, %c0_1] : memref<1x4x256xf32, #tpu.memory_space<vmem>>, vector<1x4x256xf32>
    "tpu.trace_start"() <{level = 10 : i32, message = "bis,bjs->bij"}> : () -> ()
    %cst = arith.constant dense<0.000000e+00> : vector<1x4x4xf32>
    %1 = tpu.matmul %0, %0, %cst {dimension_numbers = #tpu.dot_dimension_numbers<[2], [2], [1], [1], [0, 0, 0, 1, 1, 1], [0], [0]>} : vector<1x4x256xf32>, vector<1x4x256xf32>, vector<1x4x4xf32> -> vector<1x4x4xf32>
    "tpu.trace_stop"() : () -> ()
    %cst_2 = arith.constant dense<0xFF800000> : vector<1x4xf32>
    %2 = vector.multi_reduction <maximumf>, %1, %cst_2 [2] : vector<1x4x4xf32> to vector<1x4xf32>
    %3 = vector.shape_cast %2 : vector<1x4xf32> to vector<1x4x1xf32>
    %4 = vector.broadcast %3 : vector<1x4x1xf32> to vector<1x4x4xf32>
    %5 = arith.subf %1, %4 : vector<1x4x4xf32>
    %6 = math.exp %5 : vector<1x4x4xf32>
    %cst_3 = arith.constant dense<0.000000e+00> : vector<1x4xf32>
    %7 = vector.multi_reduction <add>, %6, %cst_3 [2] : vector<1x4x4xf32> to vector<1x4xf32>
    %8 = vector.shape_cast %7 : vector<1x4xf32> to vector<1x4x1xf32>
    %9 = tpu.reciprocal %8 {approx = true} : vector<1x4x1xf32> -> vector<1x4x1xf32>
    %10 = vector.broadcast %9 : vector<1x4x1xf32> to vector<1x4x4xf32>
    %11 = arith.mulf %6, %10 : vector<1x4x4xf32>
    "tpu.trace_start"() <{level = 10 : i32, message = "bij,bjs->bis"}> : () -> ()
    %cst_4 = arith.constant dense<0.000000e+00> : vector<1x4x256xf32>
    %12 = tpu.matmul %11, %0, %cst_4 {dimension_numbers = #tpu.dot_dimension_numbers<[2], [1], [1], [2], [0, 0, 0, 1, 1, 2], [0], [0]>} : vector<1x4x4xf32>, vector<1x4x256xf32>, vector<1x4x256xf32> -> vector<1x4x256xf32>
    "tpu.trace_stop"() : () -> ()
    %c0_5 = arith.constant 0 : index
    %13 = memref.load %arg1[%c0_5] : memref<1xf32, #tpu.memory_space<smem>>
    %14 = vector.broadcast %13 : f32 to vector<1x4x256xf32>
    %15 = arith.mulf %14, %12 : vector<1x4x256xf32>
    %16 = arith.addf %15, %0 : vector<1x4x256xf32>
    %c0_6 = arith.constant 0 : index
    %c0_7 = arith.constant 0 : index
    %c0_8 = arith.constant 0 : index
    %17 = vector.load %arg3[%c0_6, %c0_7, %c0_8] : memref<1x4x256xf32, #tpu.memory_space<vmem>>, vector<1x4x256xf32>
    tpu.vector_store %arg3[%c0_6, %c0_7, %c0_8], %16 {strides = array<i32>} : memref<1x4x256xf32, #tpu.memory_space<vmem>>, vector<1x4x256xf32>,
    return
  }
  func.func @transform_0(%arg0: i32) -> i32 {
    %c0_i32 = arith.constant 0 : i32
    %c0_i32_0 = arith.constant 0 : i32
    return %c0_i32 : i32
  }
  func.func @transform_1(%arg0: i32) -> (i32, i32, i32) {
    %c0_i32 = arith.constant 0 : i32
    %c0_i32_0 = arith.constant 0 : i32
    %c0_i32_1 = arith.constant 0 : i32
    return %arg0, %c0_i32, %c0_i32_0 : i32, i32, i32
  }
  func.func @transform_2(%arg0: i32) -> (i32, i32, i32) {
    %c0_i32 = arith.constant 0 : i32
    %c0_i32_0 = arith.constant 0 : i32
    %c0_i32_1 = arith.constant 0 : i32
    return %arg0, %c0_i32, %c0_i32_0 : i32, i32, i32
  }
}

</mosaic_0001>

<bundles_post_ra>
// kernel: tpu_custom_call.1
= control target key start
LH: loop header
LB: loop body
LE: loop exit
PB: predicated region body
PF: predicated region fallthrough
CT: control target
= control target key end

     0   :  { %s754_s0 = inlined_call_operand.<no memory space> [shape: f32[1], index: 0, kind: input, shape index: {}]   ;;  %s755_s1 = inlined_call_operand.hbm [shape: f32[2,4,256], index: 1, kind: input, shape index: {}]   ;;  %s756_s2 = inlined_call_operand.hbm [shape: f32[2,4,256], index: 2, kind: output, shape index: {}]  }
   0x1   :  { %7 = sst [smem:[#allocation2]] %s754_s0 }
   0x2   :  { %8 = vsyncpa [#allocation4], 0 }
   0x3   :  { %10 = vsyncpa [#allocation4 + $0x1], 0 }
   0x4   :  { %11 = vsyncpa [#allocation5], 0 }
   0x5   :  { %13 = vsyncpa [#allocation5 + $0x1], 0  ;;  %s609_s11 = smov 0   ;;  %s611_s12 = smov 0  }
   0x6   :  { %s613_s13 = smov 0   ;;  %s615_s14 = smov 0  }
   0x7 LB: > { %s630_s0 = sadd.s32 4294967295, %s586_s14   ;;  %s423_s15 = sadd.s32 4294967294, %s586_s14   ;;  %s586_s14 = sphi %s615_s14, %s773_s14   ;;  %s582_s13 = sphi %s613_s13, %s772_s13   ;;  %s578_s12 = sphi %s611_s12, %s771_s12   ;;  %s574_s11 = sphi %s609_s11, %s770_s11  }
   0x8   : > { %s634_s16 = sadd.s32 1, %s586_s14   ;;  %s47_s17 = sadd.s32 1, %s582_s13 }
   0x9   : > { %s44_s18 = ssub.s32 %s586_s14, %s634_s16  ;;  %p54_p0 = scmp.ne.s32.totalorder %s582_s13, %s578_s12 }
   0xa   : > { %p45_p1 = scmp.eq.s32.totalorder %s44_s18, 0  ;;  %p55_p2 = scmp.eq.s32.totalorder %s586_s14, 0 }
   0xb   : > { %p60_p3 = scmp.ne.s32.totalorder %s578_s12, %s574_s11  ;;  %p61_p4 = scmp.eq.s32.totalorder %s630_s0, 0 }
   0xc   : > { %s646_s19 = scalar_select %p45_p1, %s582_s13, %s47_s17  }
   0xd   : > { %p648_p5 = por %p55_p2, %p54_p0  ;;  %p652_p6 = por %p61_p4, %p60_p3 }
   0xe   : > { %p84_p7 = scmp.eq.s32.totalorder %s630_s0, 1  ;;  %p90_p8 = scmp.eq.s32.totalorder %s423_s15, 1 }
   0xf   : > { %s760_s21 = scalar_select %p652_p6, 1, 0 }
  0x10   : > { %p454_p10 = scmp.lt.s32.totalorder %s586_s14, 2  ;;  %p659_p11 = por %p84_p7, %p54_p0 }
  0x11   : > { %p663_p12 = por %p90_p8, %p60_p3  ;;  %s113_s24 = sand.u32 1, %s582_s13  }
  0x12   : > { %s761_s22 = scalar_select %p659_p11, 1, 0 }
  0x13   : > { %s762_s23 = scalar_select %p663_p12, 1, 0 }
  0x14   : > { %s440_s25 = sshll.u32 %s586_s14, 7  ;;  %s426_s26 = sshll.u32 %s113_s24, 3 }
  0x15   : > { %s672_s29 = scalar_lea.hbm %s755_s1, %s440_s25  ;;  %s117_s30 = scalar_lea.vmem [#allocation3], %s426_s26 }
  0x16   : > { %s125_s3 = sshll.u32 %s117_s30, 4  ;;  %p676_p13 = pnand %p454_p10, %p648_p5  ;;  %s680_s3 = int_to_ptr.vmem [resolvable:$true] %s125_s3 }
  0x17   : > { %s114_s5 = scalar_lea.sflag [#allocation4], %s113_s24  ;;  %s494_s6 = scalar_lea.hbm %s672_s29, 128 }
  0x18   : > { %p495_p2 = scmp.ne.s32.totalorder %s672_s29, %s494_s6  ;;  %p496_p3 = pneg %p676_p13 }
  0x19   : > { %s499_s9 = scalar_lea.hbm %s755_s1, 256  ;;  %p500_p5 = scmp.lt.s32.totalorder %s672_s29, %s755_s1 }
  0x1a   : > { %p497_p4 = pnand %p496_p3, %p495_p2  ;;  %p501_p8 = scmp.lt.s32.totalorder %s499_s9, %s494_s6 }
  0x1c   : > { %p498_p7 = pneg %p497_p4  ;;  %p502_p10 = por %p501_p8, %p500_p5 }
  0x1e   : > { %p503_p9 = pnand %p502_p10, %p498_p7 }
  0x20   : > { %506 = shalt.err (!%p503_p9)
}
  0x21   : > { %s507_s17 = scalar_lea.vmem %s680_s3, 128  ;;  %s588_s18 = smov [#allocation3]  }
  0x22   : > { %p508_p0 = scmp.ne.s32.totalorder %s680_s3, %s507_s17  ;;  %s512_s20 = sshll.u32 %s588_s18, 4  ;;  %s513_s20 = int_to_ptr.vmem [resolvable:$false] %s512_s20 }
  0x23   : > { %s514_s24 = scalar_lea.vmem %s513_s20, 256  ;;  %p515_p4 = scmp.lt.s32.totalorder %s680_s3, %s513_s20 }
  0x24   : > { %p510_p1 = pnand %p508_p0, %p496_p3  ;;  %p516_p12 = scmp.lt.s32.totalorder %s514_s24, %s507_s17 }
  0x26   : > { %p511_p2 = pneg %p510_p1  ;;  %p517_p11 = por %p516_p12, %p515_p4 }
  0x28   : > { %p518_p6 = pnand %p517_p11, %p511_p2 }
  0x2a   : > { %521 = shalt.err (!%p518_p6)
}
  0x2b   : > { %449 = dma.hbm_to_vmem [thread:$0]  (!%p676_p13), %s672_s29, 128, %s680_s3, %s114_s5  }
  0x2c   : > { %p764_p9 = scmp.lt.s32.totalorder %s586_s14, 3  ;;  %p765_p7 = scmp.ge.s32.totalorder %s586_s14, 1 }
  0x2e   : > { %p131_p0 = pnand %p765_p7, %p764_p9 }
  0x2f   : > { %s707_s25 = sand.u32 (!%p131_p0), 1, %s578_s12   ;;  %p766_p6 = scmp.ne.s32.totalorder (!%p131_p0), %s760_s21, 0 }
  0x30   : > { %134 = sbr.rel (%p131_p0) target bundleno = 780 (0x30c), region = 28  ;;  %s430_s26 = sshll.u32 (!%p131_p0), %s707_s25, 3 }
  0x31   : > { %s137_s27 = scalar_lea.sflag (!%p131_p0), [#allocation4], %s707_s25  ;;  %s140_s28 = scalar_lea.vmem (!%p131_p0), [#allocation3], %s430_s26 }
  0x35   : > { %565 = dma.done.wait (%p766_p6), %s137_s27, 128  }
  0x36   : > { %567 = vsyncadd (%p766_p6), %s137_s27, 4294967168  ;;  %v161_v0 = vld [vmem:[%s140_s28] sm:$0xff]  ;;  %vm235_vm0 = vcmask 27648   ;;  %vm251_vm1 = vcmask 1043456   ;;  %v589_v10 = vmov 0.0   ;;  %vm247_vm2 = vcmask 31744  }
  0x37   : > { %v163_v1 = vcombine.high %v161_v0, %v161_v0  ;;  %320 = vmatprep.mubr.f32.mxu1 %v589_v10  ;;  %s327_s21 = sld [smem:[#allocation2]]  ;;  %s441_s29 = sshll.u32 %s630_s0, 7 }
  0x38   : > { %s160_s30 = scalar_lea.vmem [#allocation6], %s430_s26  ;;  %s351_s6 = scalar_lea.hbm %s756_s2, %s441_s29 }
  0x39   : > { %195 = vmatprep.subr.mxu0 %v163_v1  ;;  %229 = vmatprep.mubr.f32.mxu0 %v163_v1  ;;  %s353_s3 = sshll.u32 %s160_s30, 4  ;;  %s339_s7 = scalar_lea.sflag [#allocation5], %s707_s25  ;;  %s354_s3 = int_to_ptr.vmem [resolvable:$true] %s353_s3 }
  0x3a   : > { %196 = vmatpush1.xpose.msra.mxu0 %v161_v0  ;;  %432 = vmatprep.subr.msk.mxu1 %vm251_vm1, %v163_v1  ;;  %s522_s8 = scalar_lea.vmem %s354_s3, 128  ;;  %p767_p12 = scmp.ne.s32.totalorder %s761_s22, 0 }
  0x3b   : > { %433 = vmatpush1.msk.msra.mxu1 %vm251_vm1, %v161_v0  ;;  %p523_p11 = scmp.ne.s32.totalorder %s354_s3, %s522_s8  ;;  %s590_s9 = smov [#allocation6]  }
  0x3c   : > { %s526_s0 = sshll.u32 %s590_s9, 4  ;;  %s527_s0 = int_to_ptr.vmem [resolvable:$false] %s526_s0 }
  0x3d   : > { %230 = vmatmul.mubr.f32.vlgmr.msra.gmra.mxu0 %v161_v0  ;;  %v328_v14 = vstv %s327_s21  ;;  %p524_p13 = pnand %p523_p11, %p767_p12  ;;  %s528_s10 = scalar_lea.vmem %s527_s0, 256 }
  0x3e   : > { %p529_p3 = scmp.lt.s32.totalorder %s354_s3, %s527_s0  ;;  %p530_p5 = scmp.lt.s32.totalorder %s528_s10, %s522_s8 }
  0x3f   : > { %p525_p1 = pneg %p524_p13 }
  0x40   : > { %p531_p8 = por %p530_p5, %p529_p3 }
  0x42   : > { %p532_p10 = pnand %p531_p8, %p525_p1 }
  0xfd   : > { %v231_v2 = vpop.f32.mrf.mxu0 }
  0xfe   : > { %v236_v3 = vsel %vm235_vm0, %v231_v2, -inf }
  0xff   : > { %237 = vmax.xlane.f32.xlu0 %v236_v3  ;;  %v233_v4 = vpop.f32.mrf.mxu0 }
 0x188   : > { %v238_v5 = vpop.xlane.xlu0 %237 }
 0x189   : > { %v239_v6 = vsub.f32 %v231_v2, %v238_v5 }
 0x18b   : > { %v240_v7 = vmul.f32 1.442695, %v239_v6 }
 0x18d   : > { %490 = vpow2.f32 %v240_v7 }
 0x19a   : > { %v491_v8 = vpop.eup %490 }
 0x19b   : > { %v242_v9 = vsel %vm235_vm0, %v491_v8, 0.0 }
 0x19c   : > { %243 = vadd.xlane.f32.xlu0 %v242_v9 }
 0x225   : > { %v244_v11 = vpop.xlane.xlu0 %243 }
 0x226   : > { %492 = vrcp.f32 %v244_v11 }
 0x233   : > { %v493_v12 = vpop.eup %492 }
 0x234   : > { %v246_v13 = vmul.f32 %v493_v12, %v491_v8 }
 0x236   : > { %434 = vmatmul.mubr.msk.f32.vlgmr.msra.gmra.mxu1 %vm247_vm2, %v246_v13 }
 0x2f6   : > { %v322_v15 = vpop.f32.mrf.mxu1 }
 0x2f7   : > { %v329_v16 = vmul.f32 %v328_v14, %v322_v15 }
 0x2f8   : > { %v324_v17 = vpop.f32.mrf.mxu1 }
 0x2f9   : > { %v330_v18 = vmul.f32 %v328_v14, %v324_v17  ;;  %v331_v19 = vadd.f32 %v329_v16, %v161_v0 }
 0x2fb   : > { %v332_v20 = vadd.f32 %v330_v18, %v163_v1 }
 0x2fd   : > { %v335_v21 = vcombine.low %v331_v19, %v332_v20 }
 0x2ff   : > { %337 = vst [vmem:[%s160_s30] sm:$0xff] %v335_v21 }
 0x300   : > { %535 = shalt.err (!%p532_p10)
}
 0x301   : > { %s536_s15 = scalar_lea.hbm %s351_s6, 128  ;;  %s540_s20 = scalar_lea.hbm %s756_s2, 256 }
 0x302   : > { %p537_p2 = scmp.ne.s32.totalorder %s351_s6, %s536_s15  ;;  %p541_p7 = scmp.lt.s32.totalorder %s351_s6, %s756_s2 }
 0x303   : > { %p542_p0 = scmp.lt.s32.totalorder %s540_s20, %s536_s15 }
 0x304   : > { %p538_p4 = pnand %p537_p2, %p767_p12 }
 0x305   : > { %p543_p6 = por %p542_p0, %p541_p7 }
 0x306   : > { %p539_p9 = pneg %p538_p4 }
 0x308   : > { %p544_p11 = pnand %p543_p6, %p539_p9 }
 0x30a   : > { %547 = shalt.err (!%p544_p11)
}
 0x30b   : > { %444 = dma.vmem_to_hbm [thread:$0]  (%p767_p12), %s354_s3, 128, %s351_s6, %s339_s7  }
 0x30c PF: > { %s365_s26 = sand.u32 1, %s574_s11   ;;  %p768_p13 = scmp.ne.s32.totalorder %s762_s23, 0 }
 0x30d   : > { %p769_p1 = scmp.ge.s32.totalorder %s586_s14, 2  ;;  %s366_s27 = scalar_lea.sflag [#allocation5], %s365_s26 }
 0x30f   : > { %p451_p3 = pnand %p769_p1, %p768_p13 }
 0x311   : > { %p452_p5 = pneg %p451_p3 }
 0x313   : > { %569 = dma.done.wait (%p452_p5), %s366_s27, 128  }
 0x314   : > { %571 = vsyncadd (%p452_p5), %s366_s27, 4294967168  ;;  %p16_p8 = scmp.ge.s32.totalorder %s634_s16, 4   ;;  %s770_s11 = smov %s578_s12 }
 0x315   : > { %s771_s12 = smov %s582_s13  ;;  %s772_s13 = smov %s646_s19 }
 0x316   : > { %s773_s14 = smov %s634_s16  ;;  %18 = sbr.rel (!%p16_p8) target bundleno = 7 (0x7), region = 73 }
 0x31b   :  { %371 = vsyncpa [#allocation4], 1 }
 0x31c   :  { %373 = vsyncpa [#allocation4 + $0x1], 1 }
 0x31d   :  { %374 = vsyncpa [#allocation5], 1 }
 0x31e   :  { %376 = vsyncpa [#allocation5 + $0x1], 1 }

</bundles_post_ra>
